<compile_context>
chip_gen: v7x
topology: tpu7x:2x2x1
jax: 0.10.0
libtpu: 0.0.40
codegen_flags: <defaults>
</compile_context>

<pallas_src>
import jax
import jax.numpy as jnp
from jax.experimental import pallas as pl
from jax.experimental.pallas import tpu as pltpu


def _round_up(v, m):
    return ((v + m - 1) // m) * m


def _conv_embedding_kernel(g_ref, w_ref, b_ref, o_ref):
    # g_ref : (TM, Ks*C_in)   im2col'd neighbourhood coordinates (tap-major,
    #                         self tap last)
    # w_ref : (Ks*C_in, H)    fully folded weight: wc @ W2^T (+ W1^T in the
    #                         last C_in rows)
    # b_ref : (1, H)          fully folded bias: conv_b @ W2^T + b1 + b2
    # o_ref : (TM, H)         output tile (lane-dense when H % 128 == 0)
    acc = jnp.dot(g_ref[...], w_ref[...], preferred_element_type=jnp.float32)
    o_ref[...] = (acc + b_ref[...].astype(jnp.float32)).astype(o_ref.dtype)


def conv_embedding_forward(x, conv_w, conv_b, w1, b1, w2, b2, nb_neighbors,
                           *, block_rows=4096, out_dtype=None):
    """Pallas equivalent of ConvEmbedding.forward.

    x      : (B, N, C_in)
    conv_w : (H, C_in, Ks)   PyTorch Conv1d weight, Ks must equal nb_neighbors+1
    conv_b : (H,)
    w1     : (H, C_in), b1: (H,)      nn.Linear(C_in, H)
    w2     : (H, H),    b2: (H,)      nn.Linear(H, H)
    returns (B, N, H)

    block_rows: rows per grid step.  4096 (default) is safe everywhere; on
    v5e/v6e (128 MiB VMEM) it can be pushed to 8192-16384 (raise
    vmem_limit_bytes past the 32 MiB scoped default for the largest sizes);
    on v7x keep <= ~8192 (64 MiB physical VMEM) and make sure the grid still
    has >= ~4 steps so the two TensorCores both get work.
    out_dtype: set to jnp.bfloat16 to halve the dominant HBM output write if
    downstream numerics tolerate it (kept f32 by default).
    """
    B, N, C_in = x.shape
    H, C_in_w, Ks = conv_w.shape
    assert C_in_w == C_in
    K = nb_neighbors
    # The torch module's final residual add only works when the conv output
    # length is 1, i.e. kernel_size == nb_neighbors + 1.
    assert Ks == K + 1, "ConvEmbedding requires kernel_size == nb_neighbors + 1"
    assert K + 1 <= N, "need nb_neighbors + 1 <= number of nodes"
    out_dtype = x.dtype if out_dtype is None else out_dtype

    # ---- k-NN selection (cdist + top-k) + gather, wrapper-side im2col ----
    # TODO(synk): the cdist/top-k sort and the data-dependent gather have no
    # clean Pallas equivalent and stay in XLA.  For large N this O(B*N^2)
    # prologue (and the (B,N,N) distance matrix it materialises) dominates
    # end-to-end cost, not the kernel; block it or use jax.lax.approx_max_k,
    # or pass knn_idx + per-batch coords and gather in-kernel.
    d2 = jnp.sum((x[:, :, None, :] - x[:, None, :, :]) ** 2, axis=-1)   # (B,N,N)
    _, idx = jax.lax.top_k(-d2, K + 1)          # K+1 nearest, nearest first
    knn_idx = idx[..., ::-1]                    # torch order: nearest (self) last
    knn_coords = jax.vmap(lambda xb, ib: xb[ib])(x, knn_idx)   # (B,N,Ks,C_in)
    g = knn_coords.reshape(B, N, Ks * C_in)     # tap-major, self tap last

    # ---- fold W2 (and W1 via the self tap) + all biases, wrapper-side ----
    hi = jax.lax.Precision.HIGHEST
    wc = jnp.transpose(conv_w, (2, 1, 0)).reshape(Ks * C_in, H)   # tap-major
    w_full = jnp.matmul(wc, w2.T, precision=hi)                   # conv then W2
    # self coords are the last tap of g, so W1 folds into the last C_in rows
    w_full = w_full.at[(Ks - 1) * C_in:, :].add(w1.T)
    b_total = (jnp.matmul(conv_b.reshape(1, H), w2.T, precision=hi)
               + b1.reshape(1, H) + b2.reshape(1, H))
    w_full = w_full.astype(jnp.float32)
    b_total = b_total.astype(jnp.float32)

    # ---- flatten (B, N) rows and tile over them ----
    R = B * N
    g2 = g.reshape(R, Ks * C_in).astype(jnp.float32)
    tm = min(block_rows, _round_up(R, 8))       # rows per grid step (mult of 8)
    Rp = _round_up(R, tm)
    if Rp != R:
        g2 = jnp.pad(g2, ((0, Rp - R), (0, 0)))
    grid = (Rp // tm,)

    out = pl.pallas_call(
        _conv_embedding_kernel,
        out_shape=jax.ShapeDtypeStruct((Rp, H), out_dtype),
        grid_spec=pltpu.PrefetchScalarGridSpec(
            num_scalar_prefetch=0,
            grid=grid,
            in_specs=[
                pl.BlockSpec((tm, Ks * C_in), lambda i: (i, 0)),
                pl.BlockSpec((Ks * C_in, H), lambda i: (0, 0)),
                pl.BlockSpec((1, H), lambda i: (0, 0)),
            ],
            out_specs=pl.BlockSpec((tm, H), lambda i: (i, 0)),
        ),
        compiler_params=pltpu.CompilerParams(
            dimension_semantics=("parallel",)),
    )(g2, w_full, b_total)

    return out[:R].reshape(B, N, H)


if __name__ == "__main__":
    # Small shapes consistent with the module docstring "(B, N, 2) -> (B, N, H)"
    B, N = 2, 16
    dim_input_nodes = 2
    nb_neighbors = 8
    kernel_size = nb_neighbors + 1     # required for the residual add
    dim_emb = 128                      # multiple of 128 -> lane-dense stores

    key = jax.random.PRNGKey(0)
    kx, kcw, kcb, k1w, k1b, k2w, k2b = jax.random.split(key, 7)

    x = jax.random.normal(kx, (B, N, dim_input_nodes), dtype=jnp.float32)

    # Deterministic init matching PyTorch defaults: U(-bound, bound)
    cb = 1.0 / (dim_input_nodes * kernel_size) ** 0.5
    conv_w = jax.random.uniform(kcw, (dim_emb, dim_input_nodes, kernel_size),
                                minval=-cb, maxval=cb, dtype=jnp.float32)
    conv_b = jax.random.uniform(kcb, (dim_emb,), minval=-cb, maxval=cb,
                                dtype=jnp.float32)
    b1w = 1.0 / dim_input_nodes ** 0.5
    w1 = jax.random.uniform(k1w, (dim_emb, dim_input_nodes),
                            minval=-b1w, maxval=b1w, dtype=jnp.float32)
    b1 = jax.random.uniform(k1b, (dim_emb,), minval=-b1w, maxval=b1w,
                            dtype=jnp.float32)
    b2w = 1.0 / dim_emb ** 0.5
    w2 = jax.random.uniform(k2w, (dim_emb, dim_emb),
                            minval=-b2w, maxval=b2w, dtype=jnp.float32)
    b2 = jax.random.uniform(k2b, (dim_emb,), minval=-b2w, maxval=b2w,
                            dtype=jnp.float32)

    out = conv_embedding_forward(x, conv_w, conv_b, w1, b1, w2, b2, nb_neighbors)
    out = jax.block_until_ready(out)

    # ---- pure-JAX reference mirroring the torch forward (unfused) ----
    # Note: jax.lax.top_k vs torch.topk may order equidistant neighbours
    # differently; outputs can diverge from PyTorch only on tied distances.
    d2 = jnp.sum((x[:, :, None, :] - x[:, None, :, :]) ** 2, axis=-1)
    _, idx = jax.lax.top_k(-d2, nb_neighbors + 1)
    knn_idx = idx[..., ::-1]                                   # nearest last
    knn_coords = jax.vmap(lambda xb, ib: xb[ib])(x, knn_idx)   # (B,N,Ks,C_in)
    conv_ref = jnp.einsum("bntc,hct->bnh", knn_coords, conv_w) + conv_b
    ref = x @ w1.T + b1 + conv_ref @ w2.T + b2

    assert out.shape == (B, N, dim_emb), out.shape
    err = float(jnp.max(jnp.abs(out - ref)))
    assert jnp.allclose(out, ref, atol=1e-4, rtol=1e-4), err
    print("KERNEL_OK")
</pallas_src>

<mosaic_0001>
module attributes {stable_mosaic.version = 11 : i64} {
  func.func @_conv_embedding_kernel(%arg0: i32, %arg1: memref<32x18xf32, #tpu.memory_space<vmem>>, %arg2: memref<18x128xf32, #tpu.memory_space<vmem>>, %arg3: memref<1x128xf32, #tpu.memory_space<vmem>>, %arg4: memref<32x128xf32, #tpu.memory_space<vmem>>) attributes {dimension_semantics = [#tpu.dimension_semantics<parallel>], iteration_bounds = array<i64: 1>, scalar_prefetch = 0 : i64, scratch_operands = 0 : i64, tpu.core_type = #tpu.core_type<tc>, window_params = [{transform_indices = @transform_0, window_bounds = array<i64: 32, 18>}, {pipeline_mode = #tpu.pipeline_mode<synchronous>, transform_indices = @transform_1, window_bounds = array<i64: 18, 128>}, {pipeline_mode = #tpu.pipeline_mode<synchronous>, transform_indices = @transform_2, window_bounds = array<i64: 1, 128>}, {transform_indices = @transform_3, window_bounds = array<i64: 32, 128>}]} {
    %c0 = arith.constant 0 : index
    %c0_0 = arith.constant 0 : index
    %0 = vector.load %arg1[%c0, %c0_0] : memref<32x18xf32, #tpu.memory_space<vmem>>, vector<32x18xf32>
    %c0_1 = arith.constant 0 : index
    %c0_2 = arith.constant 0 : index
    %1 = vector.load %arg2[%c0_1, %c0_2] : memref<18x128xf32, #tpu.memory_space<vmem>>, vector<18x128xf32>
    %cst = arith.constant dense<0.000000e+00> : vector<32x128xf32>
    %2 = tpu.matmul %0, %1, %cst {dimension_numbers = #tpu.dot_dimension_numbers<[1], [0], [0], [1], [0, 0, 1, 1], [], []>} : vector<32x18xf32>, vector<18x128xf32>, vector<32x128xf32> -> vector<32x128xf32>
    %c0_3 = arith.constant 0 : index
    %c0_4 = arith.constant 0 : index
    %3 = vector.load %arg3[%c0_3, %c0_4] : memref<1x128xf32, #tpu.memory_space<vmem>>, vector<1x128xf32>
    %4 = vector.broadcast %3 : vector<1x128xf32> to vector<32x128xf32>
    %5 = arith.addf %2, %4 : vector<32x128xf32>
    %c0_5 = arith.constant 0 : index
    %c0_6 = arith.constant 0 : index
    %6 = vector.load %arg4[%c0_5, %c0_6] : memref<32x128xf32, #tpu.memory_space<vmem>>, vector<32x128xf32>
    tpu.vector_store %arg4[%c0_5, %c0_6], %5 {strides = array<i32>} : memref<32x128xf32, #tpu.memory_space<vmem>>, vector<32x128xf32>,
    return
  }
  func.func @transform_0(%arg0: i32) -> (i32, i32) {
    %c0_i32 = arith.constant 0 : i32
    %c0_i32_0 = arith.constant 0 : i32
    return %arg0, %c0_i32 : i32, i32
  }
  func.func @transform_1(%arg0: i32) -> (i32, i32) {
    %c0_i32 = arith.constant 0 : i32
    %c0_i32_0 = arith.constant 0 : i32
    %c0_i32_1 = arith.constant 0 : i32
    return %c0_i32, %c0_i32_0 : i32, i32
  }
  func.func @transform_2(%arg0: i32) -> (i32, i32) {
    %c0_i32 = arith.constant 0 : i32
    %c0_i32_0 = arith.constant 0 : i32
    %c0_i32_1 = arith.constant 0 : i32
    return %c0_i32, %c0_i32_0 : i32, i32
  }
  func.func @transform_3(%arg0: i32) -> (i32, i32) {
    %c0_i32 = arith.constant 0 : i32
    %c0_i32_0 = arith.constant 0 : i32
    return %arg0, %c0_i32 : i32, i32
  }
}

</mosaic_0001>

<bundles_post_ra>
// kernel: tpu_custom_call.1
= control target key start
LH: loop header
LB: loop body
LE: loop exit
PB: predicated region body
PF: predicated region fallthrough
CT: control target
= control target key end

     0   :  { %vm29_vm0 = vcmask 146432   ;;  %vm42_vm1 = vcmask 1041408   ;;  %s274_s0 = inlined_call_operand.vmem [shape: f32[32,18], index: 0, kind: input, shape index: {}]   ;;  %s275_s1 = inlined_call_operand.vmem [shape: f32[18,128], index: 1, kind: input, shape index: {}]   ;;  %s276_s2 = inlined_call_operand.vmem [shape: f32[1,128], index: 2, kind: input, shape index: {}]   ;;  %s277_s3 = inlined_call_operand.hbm [shape: f32[32,128], index: 3, kind: output, shape index: {}]  }
   0x1   :  { %v19_v0 = vld [vmem:[%s275_s1] sm:$0xff]  ;;  %v20_v1 = vld [vmem:[%s275_s1 + $0x8] sm:$0xff]  ;;  %v17_v4 = vld [vmem:[%s274_s0 + $0x10] sm:$0xff] }
   0x2   :  { %v176_v2 = vpack.c.bf16 %v20_v1, %v19_v0  ;;  %v15_v3 = vld [vmem:[%s274_s0] sm:$0xff]  ;;  %v21_v5 = vld [vmem:[%s275_s1 + $0x10] sm:$0x3]  ;;  %173 = vmatprep.mubr.msk.f32.mxu1 %vm29_vm0, %v17_v4 }
   0x3   :  { %170 = vmatprep.mubr.msk.f32.mxu0 %vm29_vm0, %v15_v3 }
   0x4   :  { %8 = vsyncpa [#allocation3], 0  ;;  %177 = vmatprep.subr.bf16.mxu0 %v176_v2  ;;  %180 = vmatprep.subr.bf16.mxu1 %v176_v2  ;;  %v16_v6 = vld [vmem:[%s274_s0 + $0x8] sm:$0xff]  ;;  %v18_v7 = vld [vmem:[%s274_s0 + $0x18] sm:$0xff]  ;;  %s211_s27 = smov [#allocation2]  }
   0x5   :  { %179 = vmatpush3.bf16.msra.mxu0 %v176_v2  ;;  %182 = vmatpush3.bf16.msra.mxu1 %v176_v2  ;;  %v151_v8 = vld [vmem:[%s276_s2] ss:$0 sm:$0xff]  ;;  %s140_s28 = sshll.u32 %s211_s27, 4  ;;  %s141_s28 = int_to_ptr.vmem [resolvable:$true] %s140_s28 }
   0x6   :  { %168 = vmatprep.subr.msk.mxu0 %vm42_vm1, %v21_v5  ;;  %181 = vmatprep.subr.msk.mxu1 %vm42_vm1, %v21_v5  ;;  %s187_s0 = scalar_lea.vmem %s141_s28, 512  ;;  %p192_p1 = scmp.lt.s32.totalorder %s141_s28, %s141_s28 }
   0x7   :  { %p188_p0 = scmp.ne.s32.totalorder %s141_s28, %s187_s0  ;;  %p193_p2 = scmp.lt.s32.totalorder %s187_s0, %s187_s0 }
   0x9   :  { %169 = vmatpush3.msk.msra.mxu0 %vm42_vm1, %v21_v5  ;;  %183 = vmatpush3.msk.msra.mxu1 %vm42_vm1, %v21_v5  ;;  %p194_p3 = por %p193_p2, %p192_p1 }
   0xa   :  { %171 = vmatmul.mubr.msk.f32.vlgmr.msra.gmra.mrb[0].mxu0 %vm29_vm0, %v16_v6  ;;  %174 = vmatmul.mubr.msk.f32.vlgmr.msra.gmra.mrb[0].mxu1 %vm29_vm0, %v18_v7 }
   0xb   :  { %p195_p4 = pnand %p194_p3, %p188_p0 }
  0xdd   :  { %v172_v9 = vpop.f32.mrb[0].mxu0  ;;  %v175_v10 = vpop.f32.mrb[0].mxu1 }
  0xde   :  { %v118_v11 = vadd.f32 %v172_v9, %v151_v8  ;;  %v128_v12 = vadd.f32 %v175_v10, %v151_v8  ;;  %v112_v13 = vpop.f32.mrb[1].mxu0  ;;  %v122_v14 = vpop.f32.mrb[1].mxu1 }
  0xdf   :  { %v113_v15 = vadd.f32 %v151_v8, %v112_v13  ;;  %v123_v16 = vadd.f32 %v151_v8, %v122_v14 }
  0xe0   :  { %132 = vst [vmem:[#allocation2 + $0x8] sm:$0xff] %v118_v11  ;;  %134 = vst [vmem:[#allocation2 + $0x18] sm:$0xff] %v128_v12 }
  0xe1   :  { %131 = vst [vmem:[#allocation2] sm:$0xff] %v113_v15  ;;  %133 = vst [vmem:[#allocation2 + $0x10] sm:$0xff] %v123_v16 }
  0xe2   :  { %198 = shalt.err (!%p195_p4)
}
  0xe3   :  { %s199_s30 = scalar_lea.hbm %s277_s3, 512 }
  0xe4   :  { %p200_p5 = scmp.ne.s32.totalorder %s277_s3, %s199_s30  ;;  %p203_p6 = scmp.lt.u32.totalorder %s199_s30, %s277_s3 }
  0xe6   :  { %p205_p7 = pnand %p203_p6, %p200_p5 }
  0xe8   :  { %208 = shalt.err (!%p205_p7)
}
  0xe9   :  { %s212_s8 = smov 128   ;;  %s213_s9 = smov 8  }
  0xea   :  { %146 = dma.vmem_to_hbm [thread:$0]  %s141_s28, 512, %s277_s3, [#allocation3], %s212_s8, %s212_s8, %s213_s9  }
  0xeb   :  { %209 = dma.done.wait [#allocation3], 512  }
  0xec   :  { %210 = vsyncadd [#allocation3], 4294966784 }
  0xed   :  { %150 = vsyncpa [#allocation3], 1 }

</bundles_post_ra>
